<compile_context>
chip_gen: v5e
topology: v5e:2x2
jax: 0.10.0
libtpu: 0.0.40
codegen_flags: <defaults>
</compile_context>

<pallas_src>
import functools
import math

import jax
import jax.numpy as jnp
from jax.experimental import pallas as pl
from jax.experimental.pallas import tpu as pltpu

_VMEM_LIMIT_BYTES = 32 * 1024 * 1024   # explicit scoped-VMEM limit (safe on v5e/v6e/v7x)
_VMEM_BUDGET_BYTES = 24 * 1024 * 1024  # slab-picker budget; leaves compiler headroom


def _crop_kernel(x_ref, o_ref, *, in_top, in_left, out_top, out_left,
                 copy_h, copy_w, n1, n2):
    # x_ref: (BB, H, W) block in VMEM; o_ref: (BB, n1, n2) block in VMEM.
    # All offsets/sizes below are static Python ints baked into the kernel.
    if copy_h == n1 and copy_w == n2 and out_top == 0 and out_left == 0:
        # Pure center crop: one full-window store per grid step.
        o_ref[...] = x_ref[:, in_top:in_top + n1, in_left:in_left + n2]
    else:
        # CenterCrop's pad-with-zeros branch (crop larger than the image on at
        # least one spatial dim): zero the output, then copy the valid window.
        o_ref[...] = jnp.zeros(o_ref.shape, o_ref.dtype)
        o_ref[:, out_top:out_top + copy_h, out_left:out_left + copy_w] = (
            x_ref[:, in_top:in_top + copy_h, in_left:in_left + copy_w])


def _center_crop_geometry(size, crop):
    """Static per-dim geometry matching torchvision.transforms.CenterCrop.

    Returns (in_start, out_start, copy_len): copy `copy_len` elements starting
    at `in_start` in the input into position `out_start` of the output; the
    rest of the output (if any) is zero padding.
    """
    if crop > size:
        pad_lo = (crop - size) // 2
        pad_hi = (crop - size + 1) // 2
        padded = size + pad_lo + pad_hi
    else:
        pad_lo = 0
        padded = size
    crop_start = int(round((padded - crop) / 2.0))   # torchvision rounding rule
    out_start = max(0, pad_lo - crop_start)
    out_end = min(crop, pad_lo - crop_start + size)
    copy_len = out_end - out_start
    in_start = crop_start + out_start - pad_lo
    return in_start, out_start, copy_len


def _pick_batch_block(bc, in_slab_bytes, out_slab_bytes, vmem_budget):
    """Largest divisor of bc whose double-buffered slabs fit the VMEM budget,
    keeping at least 2 grid steps (for v7x's two TensorCores) when possible."""
    per_slab = 2 * (in_slab_bytes + out_slab_bytes)   # double-buffered in + out
    max_bb = max(1, vmem_budget // max(per_slab, 1))
    cap = bc if bc < 2 else max(1, bc // 2)           # keep >= 2 grid steps
    max_bb = min(max_bb, cap)
    for bb in range(max_bb, 0, -1):
        if bc % bb == 0:
            return bb
    return 1


def center_crop(x, n1, n2):
    """Pallas TPU equivalent of transforms.CenterCrop((n1, n2)) on (..., H, W)."""
    *lead, H, W = x.shape
    BC = int(math.prod(lead)) if lead else 1
    xf = x.reshape(BC, H, W)

    in_top, out_top, copy_h = _center_crop_geometry(H, n1)
    in_left, out_left, copy_w = _center_crop_geometry(W, n2)

    itemsize = jnp.dtype(x.dtype).itemsize
    BB = _pick_batch_block(BC, H * W * itemsize, n1 * n2 * itemsize,
                           _VMEM_BUDGET_BYTES)
    # TODO(synk): if a single (H, W) slab exceeds the VMEM budget this kernel
    # would need spatial tiling of the crop window (unaligned-offset blocks);
    # not implemented.

    kernel = functools.partial(
        _crop_kernel, in_top=in_top, in_left=in_left, out_top=out_top,
        out_left=out_left, copy_h=copy_h, copy_w=copy_w, n1=n1, n2=n2)

    out = pl.pallas_call(
        kernel,
        out_shape=jax.ShapeDtypeStruct((BC, n1, n2), x.dtype),
        grid_spec=pltpu.PrefetchScalarGridSpec(
            num_scalar_prefetch=0,
            grid=(BC // BB,),
            # last two block dims equal the full array dims -> no (8,128) issue
            in_specs=[pl.BlockSpec((BB, H, W), lambda b: (b, 0, 0))],
            out_specs=pl.BlockSpec((BB, n1, n2), lambda b: (b, 0, 0)),
        ),
        compiler_params=pltpu.CompilerParams(
            dimension_semantics=("parallel",),
            vmem_limit_bytes=_VMEM_LIMIT_BYTES,
        ),
    )(xf)
    return out.reshape(*lead, n1, n2)


if __name__ == "__main__":
    key = jax.random.PRNGKey(0)

    # Small shapes consistent with the module: (B, C, H, W) cropped to (n1, n2).
    B, C, H, W = 2, 4, 16, 16
    n1, n2 = 8, 10

    idx = jax.random.normal(key, (B, C, H, W), dtype=jnp.float32)

    out = center_crop(idx, n1, n2)
    jax.block_until_ready(out)

    # Reference: centered slice with torchvision's origin rule.
    top, _, _ = _center_crop_geometry(H, n1)
    left, _, _ = _center_crop_geometry(W, n2)
    ref = idx[:, :, top:top + n1, left:left + n2]

    assert out.shape == (B, C, n1, n2)
    assert bool(jnp.all(jnp.isfinite(out)))
    assert bool(jnp.all(out == ref))
    print("KERNEL_OK")
</pallas_src>

<mosaic_0001>
module attributes {stable_mosaic.version = 11 : i64} {
  func.func @_crop_kernel(%arg0: i32, %arg1: memref<4x16x16xf32, #tpu.memory_space<vmem>>, %arg2: memref<4x8x10xf32, #tpu.memory_space<vmem>>) attributes {dimension_semantics = [#tpu.dimension_semantics<parallel>], iteration_bounds = array<i64: 2>, scalar_prefetch = 0 : i64, scratch_operands = 0 : i64, tpu.core_type = #tpu.core_type<tc>, window_params = [{transform_indices = @transform_0, window_bounds = array<i64: 4, 16, 16>}, {transform_indices = @transform_1, window_bounds = array<i64: 4, 8, 10>}]} {
    %c0 = arith.constant 0 : index
    %c4 = arith.constant 4 : index
    %c3 = arith.constant 3 : index
    %0 = vector.load %arg1[%c0, %c4, %c3] : memref<4x16x16xf32, #tpu.memory_space<vmem>>, vector<4x8x10xf32>
    %c0_0 = arith.constant 0 : index
    %c0_1 = arith.constant 0 : index
    %c0_2 = arith.constant 0 : index
    %1 = vector.load %arg2[%c0_0, %c0_1, %c0_2] : memref<4x8x10xf32, #tpu.memory_space<vmem>>, vector<4x8x10xf32>
    tpu.vector_store %arg2[%c0_0, %c0_1, %c0_2], %0 {strides = array<i32>} : memref<4x8x10xf32, #tpu.memory_space<vmem>>, vector<4x8x10xf32>,
    return
  }
  func.func @transform_0(%arg0: i32) -> (i32, i32, i32) {
    %c0_i32 = arith.constant 0 : i32
    %c0_i32_0 = arith.constant 0 : i32
    %c0_i32_1 = arith.constant 0 : i32
    return %arg0, %c0_i32, %c0_i32_0 : i32, i32, i32
  }
  func.func @transform_1(%arg0: i32) -> (i32, i32, i32) {
    %c0_i32 = arith.constant 0 : i32
    %c0_i32_0 = arith.constant 0 : i32
    %c0_i32_1 = arith.constant 0 : i32
    return %arg0, %c0_i32, %c0_i32_0 : i32, i32, i32
  }
}

</mosaic_0001>

<bundles_post_ra>
// kernel: tpu_custom_call.1
= control target key start
LH: loop header
LB: loop body
LE: loop exit
PB: predicated region body
PF: predicated region fallthrough
CT: control target
= control target key end

     0   :  { %6 = vsyncpa [#allocation3], 0  ;;  %s564_s0 = inlined_call_operand.hbm [shape: f32[8,16,16], index: 0, kind: input, shape index: {}]   ;;  %s565_s1 = inlined_call_operand.hbm [shape: f32[8,8,10], index: 1, kind: output, shape index: {}]  }
   0x1   :  { %8 = vsyncpa [#allocation3 + $0x1], 0 }
   0x2   :  { %9 = vsyncpa [#allocation4], 0 }
   0x3   :  { %11 = vsyncpa [#allocation4 + $0x1], 0  ;;  %s436_s6 = smov 0   ;;  %s438_s7 = smov 0  }
   0x4   :  { %s440_s8 = smov 0   ;;  %s442_s9 = smov 0  }
   0x5 LB: > { %s457_s10 = sadd.s32 4294967295, %s419_s9   ;;  %s254_s11 = sadd.s32 4294967294, %s419_s9   ;;  %s419_s9 = sphi %s442_s9, %s575_s9   ;;  %s415_s8 = sphi %s440_s8, %s574_s8   ;;  %s411_s7 = sphi %s438_s7, %s573_s7   ;;  %s407_s6 = sphi %s436_s6, %s572_s6  }
   0x6   : > { %s461_s12 = sadd.s32 1, %s419_s9   ;;  %s24_s13 = sadd.s32 1, %s415_s8 }
   0x7   : > { %s21_s14 = ssub.s32 %s419_s9, %s461_s12  ;;  %p31_p0 = scmp.ne.s32.totalorder %s415_s8, %s411_s7 }
   0x8   : > { %p22_p1 = scmp.eq.s32.totalorder %s21_s14, 0  ;;  %p32_p2 = scmp.eq.s32.totalorder %s419_s9, 0 }
   0x9   : > { %p37_p3 = scmp.ne.s32.totalorder %s411_s7, %s407_s6  ;;  %p38_p4 = scmp.eq.s32.totalorder %s457_s10, 0 }
   0xa   : > { %s473_s15 = scalar_select %p22_p1, %s415_s8, %s24_s13  }
   0xb   : > { %p475_p5 = por %p32_p2, %p31_p0  ;;  %p479_p6 = por %p38_p4, %p37_p3 }
   0xc   : > { %p61_p7 = scmp.eq.s32.totalorder %s457_s10, 1  ;;  %p67_p8 = scmp.eq.s32.totalorder %s254_s11, 1 }
   0xd   : > { %p284_p10 = scmp.lt.s32.totalorder %s419_s9, 2  ;;  %s87_s20 = sand.u32 1, %s415_s8  }
   0xe   : > { %p486_p11 = por %p61_p7, %p31_p0  ;;  %p490_p12 = por %p67_p8, %p37_p3 }
   0xf   : > { %s270_s21 = sshll.u32 %s419_s9, 6  ;;  %s257_s22 = sshll.u32 %s87_s20, 6 }
  0x10   : > { %s97_s25 = scalar_lea.hbm %s564_s0, %s270_s21  ;;  %s91_s27 = scalar_lea.vmem [#allocation2], %s257_s22 }
  0x11   : > { %s98_s26 = sshll.u32 %s97_s25, 4  ;;  %s100_s28 = sshll.u32 %s91_s27, 4  ;;  %s99_s26 = int_to_ptr.hbm [resolvable:$true] %s98_s26  ;;  %s101_s28 = int_to_ptr.vmem [resolvable:$true] %s100_s28 }
  0x12   : > { %p501_p13 = pnand %p284_p10, %p475_p5  ;;  %p261_p0 = scmp.ge.s32.totalorder %s419_s9, 1 }
  0x13   : > { %p108_p1 = scmp.lt.s32.totalorder %s419_s9, 3  ;;  %s88_s30 = scalar_lea.sflag [#allocation3], %s87_s20 }
  0x14   : > { %s323_s2 = sshra.s32 %s99_s26, 4  ;;  %p327_p3 = pneg %p501_p13  ;;  %s324_s2 = int_to_ptr.hbm [resolvable:$true] %s323_s2 }
  0x15   : > { %s325_s3 = scalar_lea.hbm %s324_s2, 64  ;;  %s330_s11 = scalar_lea.hbm %s564_s0, 128 }
  0x16   : > { %p326_p2 = scmp.ne.s32.totalorder %s324_s2, %s325_s3  ;;  %p331_p5 = scmp.lt.s32.totalorder %s324_s2, %s564_s0 }
  0x17   : > { %p332_p8 = scmp.lt.s32.totalorder %s330_s11, %s325_s3 }
  0x18   : > { %p328_p4 = pnand %p327_p3, %p326_p2 }
  0x19   : > { %p333_p10 = por %p332_p8, %p331_p5 }
  0x1a   : > { %p329_p7 = pneg %p328_p4 }
  0x1c   : > { %p334_p9 = pnand %p333_p10, %p329_p7 }
  0x1e   : > { %337 = shalt.err (!%p334_p9)
}
  0x1f   : > { %s421_s16 = smov 128   ;;  %s422_s20 = smov 8  }
  0x20   : > { %279 = dma.hbm_to_vmem [thread:$0]  (!%p501_p13), %s99_s26, 1024, %s101_s28, %s88_s30, %s421_s16, %s421_s16, %s422_s20  }
  0x21   : > { %p109_p2 = pnand %p261_p0, %p108_p1 }
  0x22   : > { %s522_s21 = sand.u32 (!%p109_p2), 1, %s411_s7  }
  0x23   : > { %112 = sbr.rel (%p109_p2) target bundleno = 170 (0xaa), region = 24  ;;  %s262_s22 = sshll.u32 (!%p109_p2), %s522_s21, 6 }
  0x24   : > { %s115_s23 = scalar_lea.sflag (!%p109_p2), [#allocation3], %s522_s21  ;;  %s118_s24 = scalar_lea.vmem (!%p109_p2), [#allocation2], %s262_s22 }
  0x28   : > { %398 = dma.done.wait (%p479_p6), %s115_s23, 1024  }
  0x29   : > { %400 = vsyncadd (%p479_p6), %s115_s23, 4294966272  ;;  %v142_v0 = vld [vmem:[%s118_s24 + $0x24] sm:$0xff]  ;;  %s423_s25 = smov 125   ;;  %v143_v2 = vld [vmem:[%s118_s24 + $0x34] sm:$0xff]  ;;  %s263_s26 = sshll.u32 %s522_s21, 5  ;;  %vm160_vm0 = vcmask 80896  }
  0x2a   : > { %v140_v1 = vld [vmem:[%s118_s24 + $0x4] sm:$0xff]  ;;  %152 = vrot.lane.b32.xlu1 %v142_v0, %s423_s25  ;;  %v141_v3 = vld [vmem:[%s118_s24 + $0x14] sm:$0xff]  ;;  %s271_s27 = sshll.u32 %s457_s10, 5  ;;  %s137_s28 = scalar_lea.vmem [#allocation5], %s263_s26 }
  0x2b   : > { %148 = vrot.lane.b32.xlu0 %v140_v1, %s423_s25  ;;  %s177_s30 = scalar_lea.hbm %s565_s1, %s271_s27  ;;  %s178_s2 = sshll.u32 %s137_s28, 4  ;;  %s179_s2 = int_to_ptr.vmem [resolvable:$true] %s178_s2 }
  0x2c   : > { %s180_s3 = sshll.u32 %s177_s30, 4  ;;  %s166_s4 = scalar_lea.sflag [#allocation4], %s522_s21  ;;  %s181_s3 = int_to_ptr.hbm [resolvable:$true] %s180_s3 }
  0x2d   : > { %s367_s10 = sshra.s32 %s181_s3, 4  ;;  %s373_s14 = scalar_lea.hbm %s565_s1, 64  ;;  %s368_s10 = int_to_ptr.hbm [resolvable:$true] %s367_s10 }
  0x2e   : > { %s369_s5 = scalar_lea.hbm %s368_s10, 32  ;;  %p374_p0 = scmp.lt.s32.totalorder %s368_s10, %s565_s1 }
  0x2f   : > { %p370_p6 = scmp.ne.s32.totalorder %s368_s10, %s369_s5  ;;  %p375_p1 = scmp.lt.s32.totalorder %s373_s14, %s369_s5 }
  0x31   : > { %p371_p9 = pnand %p370_p6, %p486_p11  ;;  %p376_p3 = por %p375_p1, %p374_p0 }
  0x32   : > { %154 = vrot.lane.b32.xlu1 %v143_v2, %s423_s25 }
  0x33   : > { %150 = vrot.lane.b32.xlu0 %v141_v3, %s423_s25  ;;  %p372_p13 = pneg %p371_p9 }
  0x35   : > { %p377_p4 = pnand %p376_p3, %p372_p13 }
  0x9c   : > { %v153_v4 = vpop.permute.xlu1 %152 }
  0x9d   : > { %v149_v5 = vpop.permute.xlu0 %148  ;;  %163 = vst.msk [vmem:[%s137_s28 + $0x10] sm:$0xff] %vm160_vm0, %v153_v4 }
  0x9e   : > { %161 = vst.msk [vmem:[%s137_s28] sm:$0xff] %vm160_vm0, %v149_v5 }
  0xa4   : > { %v155_v6 = vpop.permute.xlu1 %154 }
  0xa5   : > { %v151_v7 = vpop.permute.xlu0 %150  ;;  %164 = vst.msk [vmem:[%s137_s28 + $0x18] sm:$0xff] %vm160_vm0, %v155_v6 }
  0xa6   : > { %162 = vst.msk [vmem:[%s137_s28 + $0x8] sm:$0xff] %vm160_vm0, %v151_v7 }
  0xa7   : > { %380 = shalt.err (!%p377_p4)
}
  0xa8   : > { %s424_s21 = smov 128   ;;  %s425_s22 = smov 8  }
  0xa9   : > { %274 = dma.vmem_to_hbm [thread:$0]  (%p486_p11), %s179_s2, 512, %s181_s3, %s166_s4, %s424_s21, %s424_s21, %s425_s22  }
  0xaa PF: > { %s195_s23 = sand.u32 1, %s407_s6   ;;  %p571_p7 = scmp.ge.s32.totalorder %s419_s9, 2 }
  0xab   : > { %s196_s24 = scalar_lea.sflag [#allocation4], %s195_s23 }
  0xac   : > { %p281_p5 = pnand %p571_p7, %p490_p12 }
  0xae   : > { %p282_p8 = pneg %p281_p5 }
  0xb0   : > { %402 = dma.done.wait (%p282_p8), %s196_s24, 512  }
  0xb1   : > { %404 = vsyncadd (%p282_p8), %s196_s24, 4294966784  ;;  %p14_p10 = scmp.ge.s32.totalorder %s461_s12, 4   ;;  %s572_s6 = smov %s411_s7 }
  0xb2   : > { %s573_s7 = smov %s415_s8  ;;  %s574_s8 = smov %s473_s15 }
  0xb3   : > { %s575_s9 = smov %s461_s12  ;;  %16 = sbr.rel (!%p14_p10) target bundleno = 5 (0x5), region = 69 }
  0xb8   :  { %202 = vsyncpa [#allocation3], 1 }
  0xb9   :  { %204 = vsyncpa [#allocation3 + $0x1], 1 }
  0xba   :  { %205 = vsyncpa [#allocation4], 1 }
  0xbb   :  { %207 = vsyncpa [#allocation4 + $0x1], 1 }

</bundles_post_ra>
